<compile_context>
chip_gen: v7x
topology: tpu7x:2x2x1
jax: 0.10.0
libtpu: 0.0.40
codegen_flags: <defaults>
</compile_context>

<pallas_src>
import math
import functools

import jax
import jax.numpy as jnp
from jax.experimental import pallas as pl
from jax.experimental.pallas import tpu as pltpu


_MIX1 = 0x7FEB352D
_MIX2 = 0x846CA68B


def _lowbias32(z):
    """Full 2-round integer mixer (precompute side only)."""
    z = (z ^ (z >> 16)) * jnp.uint32(_MIX1)
    z = (z ^ (z >> 15)) * jnp.uint32(_MIX2)
    return z ^ (z >> 16)


# ----------------------------------------------------------------------------
# Kernel: out = dropout(x + pe) over a lane-dense (tile_b, tile_c) block
# ----------------------------------------------------------------------------
def _pe_dropout_kernel(seed_ref, x_ref, pe_ref, hash_ref, o_ref, *,
                       p, training, k0, tile_b, tile_c, cols_folded):
    # x_ref/o_ref: (tile_b, tile_c); pe_ref: (k0, tile_c); hash_ref: (tile_b, tile_c)
    pe = pe_ref[...]
    if k0 == 1 or k0 == tile_b:
        y = x_ref[...] + pe                      # (1,tc) sublane-broadcasts
    else:
        # Folded PE repeats every k0 rows; replicate in-register (cheaper than
        # pre-tiling PE in HBM, which would multiply PE DMA traffic).
        y = x_ref[...] + jnp.concatenate([pe] * (tile_b // k0), axis=0)

    if training and p >= 1.0:
        o_ref[...] = jnp.zeros(o_ref.shape, o_ref.dtype)   # degenerate: drop all
        return

    if training and 0.0 < p < 1.0:
        c_blk = pl.program_id(0)
        b_blk = pl.program_id(1)
        # Per-tile scalar key: strong 2-round mix of (seed, absolute tile
        # offset).  Scalar-unit ops, once per grid step -- not per element.
        off = (b_blk.astype(jnp.uint32) * jnp.uint32(tile_b * cols_folded)
               + c_blk.astype(jnp.uint32) * jnp.uint32(tile_c))
        t = off ^ seed_ref[0].astype(jnp.uint32)
        t = (t ^ (t >> 16)) * jnp.uint32(_MIX1)
        t = (t ^ (t >> 15)) * jnp.uint32(_MIX2)
        t = t ^ (t >> 16)
        # Per-element VPU work: 1 xor + ONE xorshift-multiply round + compare.
        # The heavy mixing already lives in the precomputed hash table.
        z = hash_ref[...] ^ t
        z = (z ^ (z >> 16)) * jnp.uint32(_MIX1)
        z = z ^ (z >> 16)
        # Integer threshold compare: P(keep) = 1 - p.
        threshold = jnp.uint32(min(int(round(p * 2.0 ** 32)), 2 ** 32 - 1))
        keep = z >= threshold
        scale = jnp.asarray(1.0 / (1.0 - p), dtype=y.dtype)
        y = jnp.where(keep, y * scale, jnp.zeros_like(y))

    o_ref[...] = y.astype(o_ref.dtype)


# ----------------------------------------------------------------------------
# Tiling helpers
# ----------------------------------------------------------------------------
def _round_up(x, m):
    return ((x + m - 1) // m) * m


def _choose_tiles(rows, cols, itemsize, max_bytes=4 << 20):
    """rows % 8 == 0 and cols % 128 == 0 are guaranteed by the caller."""
    row_opts = [d for d in range(8, rows + 1, 8) if rows % d == 0]
    col_opts = [d for d in range(128, cols + 1, 128) if cols % d == 0]
    best_key, best = None, None
    for tb in row_opts:
        for tc in col_opts:
            nbytes = tb * tc * itemsize
            if nbytes > max_bytes:
                continue
            ntiles = (rows // tb) * (cols // tc)
            # Prefer >=2 grid tiles (v7x: 2 TensorCores share the parallel
            # grid), then the largest block under the ~4 MiB budget, then the
            # widest tile_c (longest contiguous DMA rows).
            key = (1 if ntiles >= 2 else 0, nbytes, tc)
            if best_key is None or key > best_key:
                best_key, best = key, (tb, tc)
    return best     # always exists: the minimal (8,128) block is only a few KiB


# ----------------------------------------------------------------------------
# Module-like wrapper (prepares PE / hash table once per shape+dtype)
# ----------------------------------------------------------------------------
def make_pe_table(d_model: int, max_length: int) -> jnp.ndarray:
    """Sinusoidal PE buffer, identical to the PyTorch __init__."""
    position = jnp.arange(max_length, dtype=jnp.float32)[:, None]           # (L, 1)
    div_term = jnp.exp(
        jnp.arange(0, d_model, 2, dtype=jnp.float32) * (-math.log(10000.0) / d_model)
    )                                                                        # (D/2,)
    pe = jnp.zeros((max_length, d_model), dtype=jnp.float32)
    pe = pe.at[:, 0::2].set(jnp.sin(position * div_term))
    pe = pe.at[:, 1::2].set(jnp.cos(position * div_term))
    return pe


class PositionalEncodingPallas:
    def __init__(self, d_model: int, max_length: int, dropout: float):
        self.d_model = d_model
        self.max_length = max_length
        self.p = float(dropout)
        self.pe = make_pe_table(d_model, max_length)     # (L, D) float32
        self._cache = {}                                  # (B, S, dtype) -> prep

    def _prepare(self, B, S, dtype):
        key = (B, S, jnp.dtype(dtype).name)
        if key in self._cache:
            return self._cache[key]

        C = S * self.d_model
        # Fold batch rows so the sublane dim is a multiple of 8 even for small B.
        k0 = 8 // math.gcd(B, 8)
        cols_padded = _round_up(C, 128 * k0)              # lane-dense, foldable
        rows = B * k0                                     # multiple of 8
        cols = cols_padded // k0                          # multiple of 128
        tile_b, tile_c = _choose_tiles(rows, cols, jnp.dtype(dtype).itemsize)

        # PE operand: slice/cast/flatten/pad/fold ONCE (hoisted out of forward).
        pe_row = self.pe[:S, :].astype(dtype).reshape(1, C)
        if cols_padded != C:
            pe_row = jnp.pad(pe_row, ((0, 0), (0, cols_padded - C)))
        pe_folded = pe_row.reshape(k0, cols)

        # Pre-hashed local element index (full 2-round mixer, computed once).
        r = jnp.arange(tile_b, dtype=jnp.uint32)[:, None]
        c = jnp.arange(tile_c, dtype=jnp.uint32)[None, :]
        idx_hash = _lowbias32(r * jnp.uint32(tile_c) + c)

        prep = dict(C=C, k0=k0, rows=rows, cols=cols, cols_padded=cols_padded,
                    tile_b=tile_b, tile_c=tile_c,
                    pe_folded=pe_folded, idx_hash=idx_hash)
        self._cache[key] = prep
        return prep

    def __call__(self, x, *, seed=0, training=False):
        B, S, D = x.shape
        assert D == self.d_model and S <= self.max_length
        prep = self._prepare(B, S, x.dtype)
        C, k0 = prep["C"], prep["k0"]
        rows, cols, cols_padded = prep["rows"], prep["cols"], prep["cols_padded"]
        tile_b, tile_c = prep["tile_b"], prep["tile_c"]

        x2 = x.reshape(B, C)
        if cols_padded != C:
            x2 = jnp.pad(x2, ((0, 0), (0, cols_padded - C)))    # zero tail, cut later
        x2 = x2.reshape(rows, cols)

        grid = (cols // tile_c, rows // tile_b)   # column tiles outer, rows inner
        kernel = functools.partial(
            _pe_dropout_kernel, p=self.p, training=bool(training),
            k0=k0, tile_b=tile_b, tile_c=tile_c, cols_folded=cols)

        grid_spec = pltpu.PrefetchScalarGridSpec(
            num_scalar_prefetch=1,   # int32 seed -> SMEM
            grid=grid,
            in_specs=[
                pl.BlockSpec((tile_b, tile_c), lambda ci, bi, seed: (bi, ci)),  # x
                # PE depends only on the column tile -> fetched once per column
                # tile, revisit-skipped across the inner (row/batch) axis.
                pl.BlockSpec((k0, tile_c), lambda ci, bi, seed: (0, ci)),
                # Pre-hashed local index: constant block -> DMA'd once.
                pl.BlockSpec((tile_b, tile_c), lambda ci, bi, seed: (0, 0)),
            ],
            out_specs=pl.BlockSpec((tile_b, tile_c), lambda ci, bi, seed: (bi, ci)),
        )

        seed_arr = jnp.asarray([int(seed) & 0x7FFFFFFF], dtype=jnp.int32)
        out2 = pl.pallas_call(
            kernel,
            out_shape=jax.ShapeDtypeStruct((rows, cols), x.dtype),
            grid_spec=grid_spec,
            compiler_params=pltpu.CompilerParams(
                dimension_semantics=("parallel", "parallel"),   # stateless -> megacore OK
                vmem_limit_bytes=48 * 1024 * 1024,              # < v7x 64 MiB physical
            ),
        )(seed_arr, x2, prep["pe_folded"], prep["idx_hash"])

        out2 = out2.reshape(B, cols_padded)
        if cols_padded != C:
            out2 = out2[:, :C]
        return out2.reshape(B, S, D)


if __name__ == "__main__":
    # Shapes consistent with the module's forward: (batch, seq, d_model)
    B, S, D = 2, 8, 32
    MAX_LEN = 16
    DROPOUT_P = 0.1

    key = jax.random.PRNGKey(0)
    x = jax.random.normal(key, (B, S, D), dtype=jnp.float32)

    module = PositionalEncodingPallas(d_model=D, max_length=MAX_LEN, dropout=DROPOUT_P)
    ref = x + module.pe[None, :S, :]

    # Eval mode (dropout = identity): exact semantics x + pe[:, :S, :]
    out_eval = jax.block_until_ready(module(x, seed=0, training=False))
    assert out_eval.shape == (B, S, D)
    assert jnp.allclose(out_eval, ref, atol=1e-6), "eval-mode mismatch"

    # Training mode (in-kernel stateless dropout).  Matches PyTorch dropout
    # semantics (zero w.p. p, scale 1/(1-p)), not its exact RNG stream.
    out_train = jax.block_until_ready(module(x, seed=1234, training=True))
    assert out_train.shape == (B, S, D)
    scaled_ref = ref / (1.0 - DROPOUT_P)
    dropped = out_train == 0.0
    kept_ok = jnp.isclose(out_train, scaled_ref, atol=1e-5)
    assert bool(jnp.all(jnp.logical_or(kept_ok, dropped))), \
        "train-mode dropout semantics mismatch"
    frac = float(jnp.mean(dropped.astype(jnp.float32)))
    assert 0.01 <= frac <= 0.35, f"drop fraction {frac} implausible for p={DROPOUT_P}"

    print("KERNEL_OK")
</pallas_src>

<mosaic_0001>
module attributes {stable_mosaic.version = 11 : i64} {
  func.func @_pe_dropout_kernel(%arg0: i32, %arg1: i32, %arg2: memref<1xi32, #tpu.memory_space<smem>>, %arg3: memref<8x128xf32, #tpu.memory_space<vmem>>, %arg4: memref<4x128xf32, #tpu.memory_space<vmem>>, %arg5: memref<8x128xi32, #tpu.memory_space<vmem>>, %arg6: memref<8x128xf32, #tpu.memory_space<vmem>>) attributes {dimension_semantics = [#tpu.dimension_semantics<parallel>, #tpu.dimension_semantics<parallel>], iteration_bounds = array<i64: 1, 1>, scalar_prefetch = 1 : i64, scratch_operands = 0 : i64, tpu.core_type = #tpu.core_type<tc>, window_params = [{transform_indices = @transform_0, window_bounds = array<i64: 8, 128>}, {transform_indices = @transform_1, window_bounds = array<i64: 4, 128>}, {pipeline_mode = #tpu.pipeline_mode<synchronous>, transform_indices = @transform_2, window_bounds = array<i64: 8, 128>}, {transform_indices = @transform_3, window_bounds = array<i64: 8, 128>}]} {
    %c0 = arith.constant 0 : index
    %c0_0 = arith.constant 0 : index
    %0 = vector.load %arg4[%c0, %c0_0] : memref<4x128xf32, #tpu.memory_space<vmem>>, vector<4x128xf32>
    %c0_1 = arith.constant 0 : index
    %c0_2 = arith.constant 0 : index
    %1 = vector.load %arg3[%c0_1, %c0_2] : memref<8x128xf32, #tpu.memory_space<vmem>>, vector<8x128xf32>
    %2 = tpu.concatenate %0, %0 in 0 : vector<4x128xf32>, vector<4x128xf32> -> vector<8x128xf32>
    %3 = arith.addf %1, %2 : vector<8x128xf32>
    %c0_3 = arith.constant 0 : index
    %c0_4 = arith.constant 0 : index
    %4 = vector.load %arg6[%c0_3, %c0_4] : memref<8x128xf32, #tpu.memory_space<vmem>>, vector<8x128xf32>
    tpu.vector_store %arg6[%c0_3, %c0_4], %3 {strides = array<i32>} : memref<8x128xf32, #tpu.memory_space<vmem>>, vector<8x128xf32>,
    return
  }
  func.func @transform_0(%arg0: i32, %arg1: i32, %arg2: memref<1xi32, #tpu.memory_space<smem>>) -> (i32, i32) {
    %c0_i32 = arith.constant 0 : i32
    return %arg1, %arg0 : i32, i32
  }
  func.func @transform_1(%arg0: i32, %arg1: i32, %arg2: memref<1xi32, #tpu.memory_space<smem>>) -> (i32, i32) {
    %c0_i32 = arith.constant 0 : i32
    %c0_i32_0 = arith.constant 0 : i32
    return %c0_i32, %arg0 : i32, i32
  }
  func.func @transform_2(%arg0: i32, %arg1: i32, %arg2: memref<1xi32, #tpu.memory_space<smem>>) -> (i32, i32) {
    %c0_i32 = arith.constant 0 : i32
    %c0_i32_0 = arith.constant 0 : i32
    %c0_i32_1 = arith.constant 0 : i32
    return %c0_i32, %c0_i32_0 : i32, i32
  }
  func.func @transform_3(%arg0: i32, %arg1: i32, %arg2: memref<1xi32, #tpu.memory_space<smem>>) -> (i32, i32) {
    %c0_i32 = arith.constant 0 : i32
    return %arg1, %arg0 : i32, i32
  }
}

</mosaic_0001>

<bundles_post_ra>
// kernel: tpu_custom_call.1
= control target key start
LH: loop header
LB: loop body
LE: loop exit
PB: predicated region body
PF: predicated region fallthrough
CT: control target
= control target key end

     0   :  { %10 = vsyncpa [#allocation5], 0  ;;  %s205_s0 = inlined_call_operand.<no memory space> [shape: s32[1], index: 0, kind: input, shape index: {}]   ;;  %s206_s1 = inlined_call_operand.hbm [shape: f32[8,128], index: 1, kind: input, shape index: {}]   ;;  %s207_s2 = inlined_call_operand.hbm [shape: f32[4,128], index: 2, kind: input, shape index: {}]   ;;  %s208_s3 = inlined_call_operand.vmem [shape: u32[8,128], index: 3, kind: input, shape index: {}]   ;;  %s209_s4 = inlined_call_operand.hbm [shape: f32[8,128], index: 4, kind: output, shape index: {}]  }
   0x1   :  { %11 = vsyncpa [#allocation8], 0 }
   0x2   :  { %12 = vsyncpa [#allocation6], 0  ;;  %s141_s15 = smov [#allocation4]   ;;  %s142_s17 = smov [#allocation7]  }
   0x3   :  { %s19_s16 = sshll.u32 %s141_s15, 4  ;;  %s29_s18 = sshll.u32 %s142_s17, 4  ;;  %s20_s16 = int_to_ptr.vmem [resolvable:$true] %s19_s16  ;;  %s30_s18 = int_to_ptr.vmem [resolvable:$true] %s29_s18 }
   0x4   :  { %s69_s20 = scalar_lea.hbm %s206_s1, 128 }
   0x5   :  { %p70_p0 = scmp.ne.s32.totalorder %s206_s1, %s69_s20  ;;  %p73_p1 = scmp.lt.u32.totalorder %s69_s20, %s206_s1 }
   0x7   :  { %p75_p2 = pnand %p73_p1, %p70_p0 }
   0x9   :  { %78 = shalt.err (!%p75_p2)
}
   0xa   :  { %s79_s24 = scalar_lea.vmem %s20_s16, 128  ;;  %p84_p4 = scmp.lt.s32.totalorder %s20_s16, %s20_s16 }
   0xb   :  { %p80_p3 = scmp.ne.s32.totalorder %s20_s16, %s79_s24  ;;  %p85_p5 = scmp.lt.s32.totalorder %s79_s24, %s79_s24 }
   0xd   :  { %p86_p6 = por %p85_p5, %p84_p4 }
   0xf   :  { %p87_p7 = pnand %p86_p6, %p80_p3 }
  0x11   :  { %90 = shalt.err (!%p87_p7)
}
  0x12   :  { %22 = dma.hbm_to_vmem [thread:$0]  %s206_s1, 128, %s20_s16, [#allocation5]  }
  0x13   :  { %s91_s29 = scalar_lea.hbm %s207_s2, 64 }
  0x14   :  { %p92_p8 = scmp.ne.s32.totalorder %s207_s2, %s91_s29  ;;  %p95_p9 = scmp.lt.u32.totalorder %s91_s29, %s207_s2 }
  0x16   :  { %p97_p10 = pnand %p95_p9, %p92_p8 }
  0x18   :  { %100 = shalt.err (!%p97_p10)
}
  0x19   :  { %s101_s8 = scalar_lea.vmem %s30_s18, 64  ;;  %p106_p12 = scmp.lt.s32.totalorder %s30_s18, %s30_s18 }
  0x1a   :  { %p102_p11 = scmp.ne.s32.totalorder %s30_s18, %s101_s8  ;;  %p107_p13 = scmp.lt.s32.totalorder %s101_s8, %s101_s8 }
  0x1c   :  { %p108_p0 = por %p107_p13, %p106_p12 }
  0x1e   :  { %p109_p1 = pnand %p108_p0, %p102_p11 }
  0x20   :  { %112 = shalt.err (!%p109_p1)
}
  0x21   :  { %32 = dma.hbm_to_vmem [thread:$0]  %s207_s2, 64, %s30_s18, [#allocation8]  }
  0x22   :  { %135 = dma.done.wait [#allocation5], 128  }
  0x23   :  { %136 = vsyncadd [#allocation5], 4294967168 }
  0x24   :  { %137 = dma.done.wait [#allocation8], 64  }
  0x25   :  { %138 = vsyncadd [#allocation8], 4294967232  ;;  %v41_v0 = vld [vmem:[#allocation7] sm:$0xf]  ;;  %vm46_vm0 = vcmask 1043456   ;;  %v42_v1 = vld [vmem:[#allocation4] sm:$0xff] }
  0x26   :  { %v44_v2 = vrot.slane %v41_v0, 4  ;;  %s143_s10 = smov [#allocation9]  }
  0x27   :  { %s56_s11 = sshll.u32 %s143_s10, 4  ;;  %s57_s11 = int_to_ptr.vmem [resolvable:$true] %s56_s11 }
  0x28   :  { %v47_v3 = vsel %vm46_vm0, %v41_v0, %v44_v2  ;;  %s113_s12 = scalar_lea.vmem %s57_s11, 128  ;;  %p118_p3 = scmp.lt.s32.totalorder %s57_s11, %s57_s11 }
  0x29   :  { %v48_v4 = vadd.f32 %v47_v3, %v42_v1  ;;  %p114_p2 = scmp.ne.s32.totalorder %s57_s11, %s113_s12  ;;  %p119_p4 = scmp.lt.s32.totalorder %s113_s12, %s113_s12 }
  0x2b   :  { %49 = vst [vmem:[#allocation9] sm:$0xff] %v48_v4  ;;  %p120_p5 = por %p119_p4, %p118_p3 }
  0x2d   :  { %p121_p6 = pnand %p120_p5, %p114_p2 }
  0x2f   :  { %124 = shalt.err (!%p121_p6)
}
  0x30   :  { %s125_s14 = scalar_lea.hbm %s209_s4, 128 }
  0x31   :  { %p126_p7 = scmp.ne.s32.totalorder %s209_s4, %s125_s14  ;;  %p129_p8 = scmp.lt.u32.totalorder %s125_s14, %s209_s4 }
  0x33   :  { %p131_p9 = pnand %p129_p8, %p126_p7 }
  0x35   :  { %134 = shalt.err (!%p131_p9)
}
  0x36   :  { %59 = dma.vmem_to_hbm [thread:$0]  %s57_s11, 128, %s209_s4, [#allocation6]  }
  0x37   :  { %139 = dma.done.wait [#allocation6], 128  }
  0x38   :  { %140 = vsyncadd [#allocation6], 4294967168 }
  0x39   :  { %63 = vsyncpa [#allocation5], 1 }
  0x3a   :  { %64 = vsyncpa [#allocation8], 1 }
  0x3b   :  { %65 = vsyncpa [#allocation6], 1 }

</bundles_post_ra>
